<compile_context>
chip_gen: v7x
topology: tpu7x:2x2x1
jax: 0.10.0
libtpu: 0.0.40
codegen_flags: <defaults>
</compile_context>

<pallas_src>
import jax
import jax.numpy as jnp
from jax import lax
from jax.experimental import pallas as pl
from jax.experimental.pallas import tpu as pltpu

# ---- module hyper-parameters (from the PyTorch script) ----------------------
LATENT_SIZE = 128
PROTOTYPE_SIZE = 50
PROTO_PAD = 64              # lane-padded projection width (cols 50..63 are zero)
NUM_CLASSES = 4
NUM_PROTOTYPES = 8          # args.n_proto
NUM_SLOTS_PER_CLASS = 2     # args.n_slots
INSTANCE_NORM_EPS = 1e-5    # nn.InstanceNorm1d default eps (affine=False)
MODEL_EPS = 1e-5            # self.epsilon

# packed output slab layout (last dim = 128 lanes)
OUT_LANES = 128
_XPROJ_OFF = 0                                   # [0:64)   x_projected (padded)
_SIM_OFF = PROTO_PAD                             # [64:72)  similarity
_OUT2_OFF = PROTO_PAD + NUM_PROTOTYPES           # [72:76)  out2
_TAIL_OFF = _OUT2_OFF + NUM_CLASSES              # [76:128) zeros


def _round_up(x, m):
    return ((x + m - 1) // m) * m


def _shared_pwnet_kernel(x_ref, latentp_ref, psq_ref, w1t_ref, b1_ref,
                         w2t_ref, b2_ref, ppsum_ref, out_ref):
    """One batch tile: projection net, prototype similarities, class logits,
    output softmax. Results packed into one dense 128-lane output slab."""
    w1t = w1t_ref[...]            # (LATENT, PROTO_PAD), pre-transposed, zero-padded cols
    b1 = b1_ref[...]              # (1, PROTO_PAD), zero-padded
    w2t = w2t_ref[...]            # (PROTO_PAD, PROTO_PAD), rows/cols 50..63 are EXACTLY 0
    b2 = b2_ref[...]              # (1, PROTO_PAD), zero-padded
    inv_n = 1.0 / PROTOTYPE_SIZE  # InstanceNorm statistics over the 50 real features

    # ---- projection_network(x) ------------------------------------------------
    # h's padded cols are exactly 0 (w1t pad cols + b1 pad are 0), so 64-lane
    # sums == sums over the 50 real features; divide by 50 (biased var, no affine).
    h = jnp.dot(x_ref[...], w1t, preferred_element_type=jnp.float32) + b1   # (TB, 64)
    mu = jnp.sum(h, axis=-1, keepdims=True) * inv_n
    var = jnp.sum(h * h, axis=-1, keepdims=True) * inv_n - mu * mu
    var = jnp.maximum(var, 0.0)                   # one-pass var can go slightly <0
    hn = (h - mu) * lax.rsqrt(var + INSTANCE_NORM_EPS)
    hn = jnp.maximum(hn, 0.0)                     # ReLU
    # Padded cols of hn are ReLU(-mu*rsqrt(...)) and generally NONZERO; they are
    # killed by the zero rows 50..63 of w2t. b2 pad cols are 0 -> z pad cols are 0.
    z = jnp.dot(hn, w2t, preferred_element_type=jnp.float32) + b2           # (TB, 64)

    # ---- prototype_layer: squared L2 distances + log-ratio similarity --------
    latent_p = latentp_ref[...]                                    # (P, PROTO_PAD), hoisted
    p_sq = psq_ref[...]                                            # (1, P), hoisted
    z_sq = jnp.sum(z * z, axis=-1, keepdims=True)                  # (TB, 1)
    cross = lax.dot_general(z, latent_p, (((1,), (1,)), ((), ())),
                            preferred_element_type=jnp.float32)    # (TB, P)
    l2s = jnp.maximum(z_sq + p_sq - 2.0 * cross, 0.0)              # clamp fp cancellation
    similarity = jnp.log((l2s + 1.0) / (l2s + MODEL_EPS))          # (TB, P)

    # ---- class logits + softmax (VPU/XLU; K=8,N=4 would waste an MXU pass) ----
    # out1[b, c] = sum_p sim[b,p] * ppsum[c,p]   (ppsum precomputed on host)
    pps = ppsum_ref[...]                                           # (C, P)
    logits = [jnp.sum(similarity * pps[c, :][None, :], axis=-1, keepdims=True)
              for c in range(NUM_CLASSES)]                         # C x (TB, 1)
    m = logits[0]
    for c in range(1, NUM_CLASSES):
        m = jnp.maximum(m, logits[c])
    exps = [jnp.exp(l - m) for l in logits]
    denom = exps[0]
    for c in range(1, NUM_CLASSES):
        denom = denom + exps[c]
    inv_denom = 1.0 / denom
    out2 = jnp.concatenate([e * inv_denom for e in exps], axis=-1)  # (TB, C)

    # ---- pack everything into one dense 128-lane slab, single unmasked store --
    tb = z.shape[0]
    tail = jnp.zeros((tb, OUT_LANES - _TAIL_OFF), jnp.float32)
    out_ref[...] = jnp.concatenate([z, similarity, out2, tail], axis=-1)


def shared_pwnet_forward(params, x, gumbel_scalar=0.0, tau=1.0, block_rows=2048):
    """Returns (out2, x_projected, similarity, proto_presence) like the torch module.

    block_rows: batch-tile size. 2048-4096 is a good default on v6e/v7x
    (HBM-bound kernel; big tiles amortize per-step pipeline overhead);
    ~1024-2048 already saturates v5e; v7x can go to ~8192.
    """
    if gumbel_scalar != 0.0:
        # TODO(synk): gumbel_softmax path (needs Gumbel noise sampling); only the
        # deterministic softmax branch (gumbel_scalar == 0) is implemented.
        raise NotImplementedError("gumbel_scalar != 0 not implemented")

    B = x.shape[0]

    # ---- batch-independent parameter prep (hoisted out of the kernel) --------
    # torch.softmax(proto_presence, dim=1): softmax over the prototype dim of (C, P, S).
    proto_presence = jax.nn.softmax(
        params["proto_presence"].astype(jnp.float32), axis=1)       # (C, P, S)
    # class_identity_layer is a fixed 0/1 slot-selection matrix: folding it into the
    # (parameter-only) proto_presence slot-sum removes one matmul and one input array.
    ppsum = jnp.sum(proto_presence, axis=2)                         # (C, P)

    w1 = params["w1"].astype(jnp.float32)                           # (50, 128)
    w2 = params["w2"].astype(jnp.float32)                           # (50, 50)
    b1 = jnp.asarray(params["b1"], jnp.float32).reshape(1, -1)      # (1, 50)
    b2 = jnp.asarray(params["b2"], jnp.float32).reshape(1, -1)      # (1, 50)

    # Prototype projection is parameter-only: compute it once here instead of
    # per grid step inside the kernel.
    def _projection_host(v):
        h = v @ w1.T + b1
        mu = jnp.mean(h, axis=-1, keepdims=True)
        var = jnp.mean((h - mu) ** 2, axis=-1, keepdims=True)
        h = (h - mu) * lax.rsqrt(var + INSTANCE_NORM_EPS)
        h = jnp.maximum(h, 0.0)
        return h @ w2.T + b2

    protos = params["prototypes"].astype(jnp.float32)               # (P, 128)
    latent_p = _projection_host(protos)                             # (P, 50)
    p_sq = jnp.sum(latent_p * latent_p, axis=-1).reshape(1, -1)     # (1, P)
    latent_p_pad = jnp.zeros((NUM_PROTOTYPES, PROTO_PAD), jnp.float32
                             ).at[:, :PROTOTYPE_SIZE].set(latent_p)

    # Pre-transpose + zero-pad the projection weights to the lane-padded width.
    # IMPORTANT: rows 50..63 of w2t and the padded cols of b1/b2 MUST stay zero
    # (the padded InstanceNorm'd hidden columns are nonzero; these zeros keep
    # them from leaking into z). They are zero by construction below.
    w1t = jnp.zeros((LATENT_SIZE, PROTO_PAD), jnp.float32).at[:, :PROTOTYPE_SIZE].set(w1.T)
    w2t = jnp.zeros((PROTO_PAD, PROTO_PAD), jnp.float32).at[:PROTOTYPE_SIZE, :PROTOTYPE_SIZE].set(w2.T)
    b1p = jnp.zeros((1, PROTO_PAD), jnp.float32).at[:, :PROTOTYPE_SIZE].set(b1)
    b2p = jnp.zeros((1, PROTO_PAD), jnp.float32).at[:, :PROTOTYPE_SIZE].set(b2)

    # ---- batch tiling ---------------------------------------------------------
    block_rows = _round_up(max(block_rows, 8), 8)
    TB = min(block_rows, _round_up(max(B, 1), 8))
    Bp = _round_up(B, TB)
    xp = x.astype(jnp.float32)   # optional: bf16 here cuts HBM traffic ~25%
    if Bp != B:
        xp = jnp.pad(xp, ((0, Bp - B), (0, 0)))                      # zero rows are safe

    bcast = lambda i: (0, 0)
    slab = pl.pallas_call(
        _shared_pwnet_kernel,
        out_shape=jax.ShapeDtypeStruct((Bp, OUT_LANES), jnp.float32),
        grid=(Bp // TB,),
        in_specs=[
            pl.BlockSpec((TB, LATENT_SIZE), lambda i: (i, 0)),       # x tile
            pl.BlockSpec((NUM_PROTOTYPES, PROTO_PAD), bcast),        # projected prototypes
            pl.BlockSpec((1, NUM_PROTOTYPES), bcast),                # prototype sq norms
            pl.BlockSpec((LATENT_SIZE, PROTO_PAD), bcast),           # w1^T (padded)
            pl.BlockSpec((1, PROTO_PAD), bcast),                     # b1   (padded)
            pl.BlockSpec((PROTO_PAD, PROTO_PAD), bcast),             # w2^T (padded)
            pl.BlockSpec((1, PROTO_PAD), bcast),                     # b2   (padded)
            pl.BlockSpec((NUM_CLASSES, NUM_PROTOTYPES), bcast),      # slot-summed presence
        ],
        out_specs=pl.BlockSpec((TB, OUT_LANES), lambda i: (i, 0)),
        compiler_params=pltpu.CompilerParams(
            dimension_semantics=("parallel",),      # shards batch grid over 2 TCs on v7x
            vmem_limit_bytes=32 * 1024 * 1024),
    )(xp, latent_p_pad, p_sq, w1t, b1p, w2t, b2p, ppsum)

    x_projected = slab[:B, _XPROJ_OFF:_XPROJ_OFF + PROTOTYPE_SIZE]
    similarity = slab[:B, _SIM_OFF:_SIM_OFF + NUM_PROTOTYPES]
    out2 = slab[:B, _OUT2_OFF:_OUT2_OFF + NUM_CLASSES]
    return out2, x_projected, similarity, proto_presence


# ---- pure-JAX reference (mirrors the PyTorch module exactly) ----------------
def _reference_forward(params, x):
    w1 = params["w1"].astype(jnp.float32)
    w2 = params["w2"].astype(jnp.float32)
    b1 = jnp.asarray(params["b1"], jnp.float32).reshape(1, -1)
    b2 = jnp.asarray(params["b2"], jnp.float32).reshape(1, -1)

    def proj(v):
        h = v @ w1.T + b1
        mu = jnp.mean(h, axis=-1, keepdims=True)
        var = jnp.mean((h - mu) ** 2, axis=-1, keepdims=True)
        h = (h - mu) / jnp.sqrt(var + INSTANCE_NORM_EPS)
        h = jnp.maximum(h, 0.0)
        return h @ w2.T + b2

    z = proj(x.astype(jnp.float32))
    lat = proj(params["prototypes"].astype(jnp.float32))
    l2s = jnp.sum((z[:, None, :] - lat[None, :, :]) ** 2, axis=-1)
    sim = jnp.log((l2s + 1.0) / (l2s + MODEL_EPS))
    pp = jax.nn.softmax(params["proto_presence"].astype(jnp.float32), axis=1)   # (C, P, S)
    mixed = jnp.einsum("bp,cpn->bcn", sim, pp).reshape(x.shape[0], -1)          # (B, C*S)
    rows = jnp.arange(NUM_CLASSES)[:, None]
    cols = jnp.arange(NUM_CLASSES * NUM_SLOTS_PER_CLASS)[None, :]
    class_w = (cols // NUM_SLOTS_PER_CLASS == rows).astype(jnp.float32)         # (C, C*S)
    out1 = mixed @ class_w.T
    out2 = jax.nn.softmax(out1, axis=-1)
    return out2, z, sim, pp


def init_params(key):
    """Deterministic synthetic parameters matching the module's shapes (torch layout)."""
    k = jax.random.split(key, 6)
    w1 = 0.05 * jax.random.normal(k[0], (PROTOTYPE_SIZE, LATENT_SIZE), jnp.float32)
    b1 = 0.01 * jax.random.normal(k[1], (PROTOTYPE_SIZE,), jnp.float32)
    w2 = 0.05 * jax.random.normal(k[2], (PROTOTYPE_SIZE, PROTOTYPE_SIZE), jnp.float32)
    b2 = 0.01 * jax.random.normal(k[3], (PROTOTYPE_SIZE,), jnp.float32)
    prototypes = jax.random.normal(k[4], (NUM_PROTOTYPES, LATENT_SIZE), jnp.float32)
    # xavier_normal_ on (C, P, S): std = sqrt(2 / (fan_in + fan_out)) over last two dims
    xavier_std = (2.0 / (NUM_PROTOTYPES + NUM_SLOTS_PER_CLASS)) ** 0.5
    proto_presence = xavier_std * jax.random.normal(
        k[5], (NUM_CLASSES, NUM_PROTOTYPES, NUM_SLOTS_PER_CLASS), jnp.float32)
    return dict(w1=w1, b1=b1, w2=w2, b2=b2, prototypes=prototypes,
                proto_presence=proto_presence)


if __name__ == "__main__":
    key = jax.random.PRNGKey(0)
    pkey, xkey = jax.random.split(key)
    params = init_params(pkey)

    batch = 4
    x = jax.random.normal(xkey, (batch, LATENT_SIZE), jnp.float32)

    out2, xproj, sim, proto_presence = shared_pwnet_forward(params, x,
                                                            gumbel_scalar=0.0, tau=1.0)
    jax.block_until_ready((out2, xproj, sim, proto_presence))

    assert out2.shape == (batch, NUM_CLASSES)
    assert xproj.shape == (batch, PROTOTYPE_SIZE)
    assert sim.shape == (batch, NUM_PROTOTYPES)
    assert proto_presence.shape == (NUM_CLASSES, NUM_PROTOTYPES, NUM_SLOTS_PER_CLASS)
    # sanity: both softmaxes produce probability rows
    assert bool(jnp.allclose(jnp.sum(out2, axis=-1), 1.0, atol=1e-5))
    assert bool(jnp.allclose(jnp.sum(proto_presence, axis=1), 1.0, atol=1e-5))

    # numerical check against the pure-JAX reference of the torch module
    r_out2, r_xproj, r_sim, r_pp = _reference_forward(params, x)
    assert bool(jnp.allclose(out2, r_out2, rtol=2e-3, atol=2e-3))
    assert bool(jnp.allclose(xproj, r_xproj, rtol=2e-3, atol=2e-3))
    assert bool(jnp.allclose(sim, r_sim, rtol=2e-3, atol=2e-3))
    assert bool(jnp.allclose(proto_presence, r_pp, rtol=1e-6, atol=1e-6))

    print("KERNEL_OK")
</pallas_src>

<mosaic_0001>
module attributes {stable_mosaic.version = 11 : i64} {
  func.func @_shared_pwnet_kernel(%arg0: i32, %arg1: memref<8x128xf32, #tpu.memory_space<vmem>>, %arg2: memref<8x64xf32, #tpu.memory_space<vmem>>, %arg3: memref<1x8xf32, #tpu.memory_space<vmem>>, %arg4: memref<128x64xf32, #tpu.memory_space<vmem>>, %arg5: memref<1x64xf32, #tpu.memory_space<vmem>>, %arg6: memref<64x64xf32, #tpu.memory_space<vmem>>, %arg7: memref<1x64xf32, #tpu.memory_space<vmem>>, %arg8: memref<4x8xf32, #tpu.memory_space<vmem>>, %arg9: memref<8x128xf32, #tpu.memory_space<vmem>>) attributes {dimension_semantics = [#tpu.dimension_semantics<parallel>], iteration_bounds = array<i64: 1>, scalar_prefetch = 0 : i64, scratch_operands = 0 : i64, tpu.core_type = #tpu.core_type<tc>, window_params = [{transform_indices = @transform_0, window_bounds = array<i64: 8, 128>}, {pipeline_mode = #tpu.pipeline_mode<synchronous>, transform_indices = @transform_1, window_bounds = array<i64: 8, 64>}, {pipeline_mode = #tpu.pipeline_mode<synchronous>, transform_indices = @transform_2, window_bounds = array<i64: 1, 8>}, {pipeline_mode = #tpu.pipeline_mode<synchronous>, transform_indices = @transform_3, window_bounds = array<i64: 128, 64>}, {pipeline_mode = #tpu.pipeline_mode<synchronous>, transform_indices = @transform_4, window_bounds = array<i64: 1, 64>}, {pipeline_mode = #tpu.pipeline_mode<synchronous>, transform_indices = @transform_5, window_bounds = array<i64: 64, 64>}, {pipeline_mode = #tpu.pipeline_mode<synchronous>, transform_indices = @transform_6, window_bounds = array<i64: 1, 64>}, {pipeline_mode = #tpu.pipeline_mode<synchronous>, transform_indices = @transform_7, window_bounds = array<i64: 4, 8>}, {transform_indices = @transform_8, window_bounds = array<i64: 8, 128>}]} {
    %c0 = arith.constant 0 : index
    %c0_0 = arith.constant 0 : index
    %0 = vector.load %arg4[%c0, %c0_0] : memref<128x64xf32, #tpu.memory_space<vmem>>, vector<128x64xf32>
    %c0_1 = arith.constant 0 : index
    %c0_2 = arith.constant 0 : index
    %1 = vector.load %arg5[%c0_1, %c0_2] : memref<1x64xf32, #tpu.memory_space<vmem>>, vector<1x64xf32>
    %c0_3 = arith.constant 0 : index
    %c0_4 = arith.constant 0 : index
    %2 = vector.load %arg6[%c0_3, %c0_4] : memref<64x64xf32, #tpu.memory_space<vmem>>, vector<64x64xf32>
    %c0_5 = arith.constant 0 : index
    %c0_6 = arith.constant 0 : index
    %3 = vector.load %arg7[%c0_5, %c0_6] : memref<1x64xf32, #tpu.memory_space<vmem>>, vector<1x64xf32>
    %c0_7 = arith.constant 0 : index
    %c0_8 = arith.constant 0 : index
    %4 = vector.load %arg1[%c0_7, %c0_8] : memref<8x128xf32, #tpu.memory_space<vmem>>, vector<8x128xf32>
    %cst = arith.constant dense<0.000000e+00> : vector<8x64xf32>
    %5 = tpu.matmul %4, %0, %cst {dimension_numbers = #tpu.dot_dimension_numbers<[1], [0], [0], [1], [0, 0, 1, 1], [], []>} : vector<8x128xf32>, vector<128x64xf32>, vector<8x64xf32> -> vector<8x64xf32>
    %6 = vector.broadcast %1 : vector<1x64xf32> to vector<8x64xf32>
    %7 = arith.addf %5, %6 : vector<8x64xf32>
    %cst_9 = arith.constant dense<0.000000e+00> : vector<8xf32>
    %8 = vector.multi_reduction <add>, %7, %cst_9 [1] : vector<8x64xf32> to vector<8xf32>
    %9 = vector.shape_cast %8 : vector<8xf32> to vector<8x1xf32>
    %cst_10 = arith.constant 2.000000e-02 : f32
    %10 = vector.broadcast %cst_10 : f32 to vector<8x1xf32>
    %11 = arith.mulf %9, %10 : vector<8x1xf32>
    %12 = arith.mulf %7, %7 : vector<8x64xf32>
    %cst_11 = arith.constant dense<0.000000e+00> : vector<8xf32>
    %13 = vector.multi_reduction <add>, %12, %cst_11 [1] : vector<8x64xf32> to vector<8xf32>
    %14 = vector.shape_cast %13 : vector<8xf32> to vector<8x1xf32>
    %cst_12 = arith.constant 2.000000e-02 : f32
    %15 = vector.broadcast %cst_12 : f32 to vector<8x1xf32>
    %16 = arith.mulf %14, %15 : vector<8x1xf32>
    %17 = arith.mulf %11, %11 : vector<8x1xf32>
    %18 = arith.subf %16, %17 : vector<8x1xf32>
    %cst_13 = arith.constant 0.000000e+00 : f32
    %19 = vector.broadcast %cst_13 : f32 to vector<8x1xf32>
    %20 = arith.maximumf %18, %19 : vector<8x1xf32>
    %21 = vector.broadcast %11 : vector<8x1xf32> to vector<8x64xf32>
    %22 = arith.subf %7, %21 : vector<8x64xf32>
    %cst_14 = arith.constant 9.99999974E-6 : f32
    %23 = vector.broadcast %cst_14 : f32 to vector<8x1xf32>
    %24 = arith.addf %20, %23 : vector<8x1xf32>
    %25 = math.rsqrt %24 : vector<8x1xf32>
    %26 = vector.broadcast %25 : vector<8x1xf32> to vector<8x64xf32>
    %27 = arith.mulf %22, %26 : vector<8x64xf32>
    %cst_15 = arith.constant 0.000000e+00 : f32
    %28 = vector.broadcast %cst_15 : f32 to vector<8x64xf32>
    %29 = arith.maximumf %27, %28 : vector<8x64xf32>
    %cst_16 = arith.constant dense<0.000000e+00> : vector<8x64xf32>
    %30 = tpu.matmul %29, %2, %cst_16 {dimension_numbers = #tpu.dot_dimension_numbers<[1], [0], [0], [1], [0, 0, 1, 1], [], []>} : vector<8x64xf32>, vector<64x64xf32>, vector<8x64xf32> -> vector<8x64xf32>
    %31 = vector.broadcast %3 : vector<1x64xf32> to vector<8x64xf32>
    %32 = arith.addf %30, %31 : vector<8x64xf32>
    %c0_17 = arith.constant 0 : index
    %c0_18 = arith.constant 0 : index
    %33 = vector.load %arg2[%c0_17, %c0_18] : memref<8x64xf32, #tpu.memory_space<vmem>>, vector<8x64xf32>
    %c0_19 = arith.constant 0 : index
    %c0_20 = arith.constant 0 : index
    %34 = vector.load %arg3[%c0_19, %c0_20] : memref<1x8xf32, #tpu.memory_space<vmem>>, vector<1x8xf32>
    %35 = arith.mulf %32, %32 : vector<8x64xf32>
    %cst_21 = arith.constant dense<0.000000e+00> : vector<8xf32>
    %36 = vector.multi_reduction <add>, %35, %cst_21 [1] : vector<8x64xf32> to vector<8xf32>
    %37 = vector.shape_cast %36 : vector<8xf32> to vector<8x1xf32>
    %cst_22 = arith.constant dense<0.000000e+00> : vector<8x8xf32>
    %38 = tpu.matmul %32, %33, %cst_22 {dimension_numbers = #tpu.dot_dimension_numbers<[1], [1], [0], [0], [0, 0, 1, 0], [], []>} : vector<8x64xf32>, vector<8x64xf32>, vector<8x8xf32> -> vector<8x8xf32>
    %39 = vector.broadcast %37 : vector<8x1xf32> to vector<8x8xf32>
    %40 = vector.broadcast %34 : vector<1x8xf32> to vector<8x8xf32>
    %41 = arith.addf %39, %40 : vector<8x8xf32>
    %cst_23 = arith.constant 2.000000e+00 : f32
    %42 = vector.broadcast %cst_23 : f32 to vector<8x8xf32>
    %43 = arith.mulf %42, %38 : vector<8x8xf32>
    %44 = arith.subf %41, %43 : vector<8x8xf32>
    %cst_24 = arith.constant 0.000000e+00 : f32
    %45 = vector.broadcast %cst_24 : f32 to vector<8x8xf32>
    %46 = arith.maximumf %44, %45 : vector<8x8xf32>
    %cst_25 = arith.constant 1.000000e+00 : f32
    %47 = vector.broadcast %cst_25 : f32 to vector<8x8xf32>
    %48 = arith.addf %46, %47 : vector<8x8xf32>
    %cst_26 = arith.constant 9.99999974E-6 : f32
    %49 = vector.broadcast %cst_26 : f32 to vector<8x8xf32>
    %50 = arith.addf %46, %49 : vector<8x8xf32>
    %51 = arith.divf %48, %50 : vector<8x8xf32>
    %52 = math.log %51 : vector<8x8xf32>
    %c0_27 = arith.constant 0 : index
    %c0_28 = arith.constant 0 : index
    %53 = vector.load %arg8[%c0_27, %c0_28] : memref<4x8xf32, #tpu.memory_space<vmem>>, vector<4x8xf32>
    %54 = vector.extract_strided_slice %53 {offsets = [0, 0], sizes = [1, 8], strides = [1, 1]} : vector<4x8xf32> to vector<1x8xf32>
    %55 = vector.shape_cast %54 : vector<1x8xf32> to vector<8xf32>
    %56 = vector.shape_cast %55 : vector<8xf32> to vector<1x8xf32>
    %57 = vector.broadcast %56 : vector<1x8xf32> to vector<8x8xf32>
    %58 = arith.mulf %52, %57 : vector<8x8xf32>
    %cst_29 = arith.constant dense<0.000000e+00> : vector<8xf32>
    %59 = vector.multi_reduction <add>, %58, %cst_29 [1] : vector<8x8xf32> to vector<8xf32>
    %60 = vector.shape_cast %59 : vector<8xf32> to vector<8x1xf32>
    %61 = vector.extract_strided_slice %53 {offsets = [1, 0], sizes = [1, 8], strides = [1, 1]} : vector<4x8xf32> to vector<1x8xf32>
    %62 = vector.shape_cast %61 : vector<1x8xf32> to vector<8xf32>
    %63 = vector.shape_cast %62 : vector<8xf32> to vector<1x8xf32>
    %64 = vector.broadcast %63 : vector<1x8xf32> to vector<8x8xf32>
    %65 = arith.mulf %52, %64 : vector<8x8xf32>
    %cst_30 = arith.constant dense<0.000000e+00> : vector<8xf32>
    %66 = vector.multi_reduction <add>, %65, %cst_30 [1] : vector<8x8xf32> to vector<8xf32>
    %67 = vector.shape_cast %66 : vector<8xf32> to vector<8x1xf32>
    %68 = vector.extract_strided_slice %53 {offsets = [2, 0], sizes = [1, 8], strides = [1, 1]} : vector<4x8xf32> to vector<1x8xf32>
    %69 = vector.shape_cast %68 : vector<1x8xf32> to vector<8xf32>
    %70 = vector.shape_cast %69 : vector<8xf32> to vector<1x8xf32>
    %71 = vector.broadcast %70 : vector<1x8xf32> to vector<8x8xf32>
    %72 = arith.mulf %52, %71 : vector<8x8xf32>
    %cst_31 = arith.constant dense<0.000000e+00> : vector<8xf32>
    %73 = vector.multi_reduction <add>, %72, %cst_31 [1] : vector<8x8xf32> to vector<8xf32>
    %74 = vector.shape_cast %73 : vector<8xf32> to vector<8x1xf32>
    %75 = vector.extract_strided_slice %53 {offsets = [3, 0], sizes = [1, 8], strides = [1, 1]} : vector<4x8xf32> to vector<1x8xf32>
    %76 = vector.shape_cast %75 : vector<1x8xf32> to vector<8xf32>
    %77 = vector.shape_cast %76 : vector<8xf32> to vector<1x8xf32>
    %78 = vector.broadcast %77 : vector<1x8xf32> to vector<8x8xf32>
    %79 = arith.mulf %52, %78 : vector<8x8xf32>
    %cst_32 = arith.constant dense<0.000000e+00> : vector<8xf32>
    %80 = vector.multi_reduction <add>, %79, %cst_32 [1] : vector<8x8xf32> to vector<8xf32>
    %81 = vector.shape_cast %80 : vector<8xf32> to vector<8x1xf32>
    %82 = arith.maximumf %60, %67 : vector<8x1xf32>
    %83 = arith.maximumf %82, %74 : vector<8x1xf32>
    %84 = arith.maximumf %83, %81 : vector<8x1xf32>
    %85 = arith.subf %60, %84 : vector<8x1xf32>
    %86 = math.exp %85 : vector<8x1xf32>
    %87 = arith.subf %67, %84 : vector<8x1xf32>
    %88 = math.exp %87 : vector<8x1xf32>
    %89 = arith.subf %74, %84 : vector<8x1xf32>
    %90 = math.exp %89 : vector<8x1xf32>
    %91 = arith.subf %81, %84 : vector<8x1xf32>
    %92 = math.exp %91 : vector<8x1xf32>
    %93 = arith.addf %86, %88 : vector<8x1xf32>
    %94 = arith.addf %93, %90 : vector<8x1xf32>
    %95 = arith.addf %94, %92 : vector<8x1xf32>
    %cst_33 = arith.constant 1.000000e+00 : f32
    %96 = vector.broadcast %cst_33 : f32 to vector<8x1xf32>
    %97 = arith.divf %96, %95 : vector<8x1xf32>
    %98 = arith.mulf %86, %97 : vector<8x1xf32>
    %99 = arith.mulf %88, %97 : vector<8x1xf32>
    %100 = arith.mulf %90, %97 : vector<8x1xf32>
    %101 = arith.mulf %92, %97 : vector<8x1xf32>
    %102 = tpu.concatenate %98, %99, %100, %101 in 1 : vector<8x1xf32>, vector<8x1xf32>, vector<8x1xf32>, vector<8x1xf32> -> vector<8x4xf32>
    %cst_34 = arith.constant 0.000000e+00 : f32
    %103 = vector.broadcast %cst_34 : f32 to vector<8x52xf32>
    %104 = tpu.concatenate %32, %52, %102, %103 in 1 : vector<8x64xf32>, vector<8x8xf32>, vector<8x4xf32>, vector<8x52xf32> -> vector<8x128xf32>
    %c0_35 = arith.constant 0 : index
    %c0_36 = arith.constant 0 : index
    %105 = vector.load %arg9[%c0_35, %c0_36] : memref<8x128xf32, #tpu.memory_space<vmem>>, vector<8x128xf32>
    tpu.vector_store %arg9[%c0_35, %c0_36], %104 {strides = array<i32>} : memref<8x128xf32, #tpu.memory_space<vmem>>, vector<8x128xf32>,
    return
  }
  func.func @transform_0(%arg0: i32) -> (i32, i32) {
    %c0_i32 = arith.constant 0 : i32
    %c0_i32_0 = arith.constant 0 : i32
    return %arg0, %c0_i32 : i32, i32
  }
  func.func @transform_1(%arg0: i32) -> (i32, i32) {
    %c0_i32 = arith.constant 0 : i32
    %c0_i32_0 = arith.constant 0 : i32
    %c0_i32_1 = arith.constant 0 : i32
    return %c0_i32, %c0_i32_0 : i32, i32
  }
  func.func @transform_2(%arg0: i32) -> (i32, i32) {
    %c0_i32 = arith.constant 0 : i32
    %c0_i32_0 = arith.constant 0 : i32
    %c0_i32_1 = arith.constant 0 : i32
    return %c0_i32, %c0_i32_0 : i32, i32
  }
  func.func @transform_3(%arg0: i32) -> (i32, i32) {
    %c0_i32 = arith.constant 0 : i32
    %c0_i32_0 = arith.constant 0 : i32
    %c0_i32_1 = arith.constant 0 : i32
    return %c0_i32, %c0_i32_0 : i32, i32
  }
  func.func @transform_4(%arg0: i32) -> (i32, i32) {
    %c0_i32 = arith.constant 0 : i32
    %c0_i32_0 = arith.constant 0 : i32
    %c0_i32_1 = arith.constant 0 : i32
    return %c0_i32, %c0_i32_0 : i32, i32
  }
  func.func @transform_5(%arg0: i32) -> (i32, i32) {
    %c0_i32 = arith.constant 0 : i32
    %c0_i32_0 = arith.constant 0 : i32
    %c0_i32_1 = arith.constant 0 : i32
    return %c0_i32, %c0_i32_0 : i32, i32
  }
  func.func @transform_6(%arg0: i32) -> (i32, i32) {
    %c0_i32 = arith.constant 0 : i32
    %c0_i32_0 = arith.constant 0 : i32
    %c0_i32_1 = arith.constant 0 : i32
    return %c0_i32, %c0_i32_0 : i32, i32
  }
  func.func @transform_7(%arg0: i32) -> (i32, i32) {
    %c0_i32 = arith.constant 0 : i32
    %c0_i32_0 = arith.constant 0 : i32
    %c0_i32_1 = arith.constant 0 : i32
    return %c0_i32, %c0_i32_0 : i32, i32
  }
  func.func @transform_8(%arg0: i32) -> (i32, i32) {
    %c0_i32 = arith.constant 0 : i32
    %c0_i32_0 = arith.constant 0 : i32
    return %arg0, %c0_i32 : i32, i32
  }
}

</mosaic_0001>

<bundles_post_ra>
// kernel: tpu_custom_call.1
= control target key start
LH: loop header
LB: loop body
LE: loop exit
PB: predicated region body
PF: predicated region fallthrough
CT: control target
= control target key end

     0   :  { %v595_v3 = vmov 0.0|0.0   ;;  %vm596_vm0 = vmmov 0   ;;  %v597_v6 = vmov 0.0   ;;  %s780_s0 = inlined_call_operand.vmem [shape: f32[8,128], index: 0, kind: input, shape index: {}]   ;;  %s781_s1 = inlined_call_operand.vmem [shape: f32[8,64], index: 1, kind: input, shape index: {}]   ;;  %s782_s2 = inlined_call_operand.vmem [shape: f32[1,8], index: 2, kind: input, shape index: {}]   ;;  %s783_s3 = inlined_call_operand.vmem [shape: f32[128,64], index: 3, kind: input, shape index: {}]   ;;  %s784_s4 = inlined_call_operand.vmem [shape: f32[1,64], index: 4, kind: input, shape index: {}]   ;;  %s785_s5 = inlined_call_operand.vmem [shape: f32[64,64], index: 5, kind: input, shape index: {}]   ;;  %s786_s6 = inlined_call_operand.vmem [shape: f32[1,64], index: 6, kind: input, shape index: {}]   ;;  %s787_s7 = inlined_call_operand.vmem [shape: f32[4,8], index: 7, kind: input, shape index: {}]   ;;  %s788_s8 = inlined_call_operand.hbm [shape: f32[8,128], index: 8, kind: output, shape index: {}]  }
   0x1   :  { %v30_v0 = vld [vmem:[%s783_s3] sm:$0xff]  ;;  %v31_v1 = vld [vmem:[%s783_s3 + $0x8] sm:$0xff]  ;;  %v32_v2 = vld [vmem:[%s783_s3 + $0x10] sm:$0xff]  ;;  %513 = vmatprep.subr.bf16.mxu0 %v595_v3  ;;  %486 = vmatprep.mubr.msk.f32.mxu0 %vm596_vm0, %v597_v6 }
   0x2   :  { %v514_v4 = vpack.c.bf16 %v31_v1, %v30_v0  ;;  %v33_v5 = vld [vmem:[%s783_s3 + $0x18] sm:$0xff]  ;;  %537 = vmatprep.subr.bf16.mxu1 %v595_v3  ;;  %505 = vmatprep.mubr.msk.f32.mxu1 %vm596_vm0, %v597_v6  ;;  %v34_v8 = vld [vmem:[%s783_s3 + $0x20] sm:$0xff]  ;;  %v35_v9 = vld [vmem:[%s783_s3 + $0x28] sm:$0xff] }
   0x3   :  { %v517_v7 = vpack.c.bf16 %v33_v5, %v32_v2 }
   0x4   :  { %515 = vmatpush3.bf16.msra.mxu0 %v514_v4 }
   0x5   :  { %516 = vmatprep.subr.bf16.mxu0 %v595_v3 }
   0x6   :  { %13 = vsyncpa [#allocation3], 0  ;;  %v520_v10 = vpack.c.bf16 %v35_v9, %v34_v8  ;;  %v36_v11 = vld [vmem:[%s783_s3 + $0x30] sm:$0xff]  ;;  %v37_v12 = vld [vmem:[%s783_s3 + $0x38] sm:$0xff]  ;;  %vm133_vm1 = vcmask 523264   ;;  %vm334_vm2 = vcmask 64512  }
   0x7   :  { %v523_v13 = vpack.c.bf16 %v37_v12, %v36_v11  ;;  %v38_v14 = vld [vmem:[%s783_s3 + $0x40] sm:$0xff]  ;;  %v39_v15 = vld [vmem:[%s783_s3 + $0x48] sm:$0xff]  ;;  %v40_v17 = vld [vmem:[%s783_s3 + $0x50] sm:$0xff]  ;;  %v329_v12 = vlaneseq  ;;  %vm386_vm3 = vcmask 7168   ;;  %vm388_vm4 = vcmask 15360   ;;  %s600_s15 = smov [#allocation2]  }
   0x8   :  { %518 = vmatpush3.bf16.msra.mxu0 %v517_v7  ;;  %v526_v16 = vpack.c.bf16 %v39_v15, %v38_v14  ;;  %v41_v18 = vld [vmem:[%s783_s3 + $0x58] sm:$0xff]  ;;  %v42_v20 = vld [vmem:[%s783_s3 + $0x60] sm:$0xff]  ;;  %v43_v21 = vld [vmem:[%s783_s3 + $0x68] sm:$0xff]  ;;  %vm390_vm5 = vcmask 23552   ;;  %vm401_vm6 = vcmask 588800   ;;  %s412_s16 = sshll.u32 %s600_s15, 4  ;;  %s413_s16 = int_to_ptr.vmem [resolvable:$true] %s412_s16 }
   0x9   :  { %519 = vmatprep.subr.bf16.mxu0 %v595_v3  ;;  %v529_v19 = vpack.c.bf16 %v41_v18, %v40_v17  ;;  %v532_v22 = vpack.c.bf16 %v43_v21, %v42_v20  ;;  %v44_v23 = vld [vmem:[%s783_s3 + $0x70] sm:$0xff]  ;;  %v45_v24 = vld [vmem:[%s783_s3 + $0x78] sm:$0xff]  ;;  %v56_v26 = vld [vmem:[%s780_s0] sm:$0xff]  ;;  %v330_v14 = vshrl.u32 %v329_v12, 7  ;;  %vm403_vm7 = vcmask 621568   ;;  %s571_s17 = scalar_lea.vmem %s413_s16, 128  ;;  %p576_p1 = scmp.lt.s32.totalorder %s413_s16, %s413_s16 }
   0xa   :  { %v535_v25 = vpack.c.bf16 %v45_v24, %v44_v23  ;;  %v420_v27 = vld [vmem:[%s784_s4] ss:$0 sm:$0xff]  ;;  %v48_v35 = vld [vmem:[%s785_s5 + $0x8] sm:$0xff]  ;;  %v49_v37 = vld [vmem:[%s785_s5 + $0x10] sm:$0xff]  ;;  %p572_p0 = scmp.ne.s32.totalorder %s413_s16, %s571_s17  ;;  %p577_p2 = scmp.lt.s32.totalorder %s571_s17, %s571_s17 }
   0xb   :  { %v47_v34 = vld [vmem:[%s785_s5] sm:$0xff]  ;;  %v50_v38 = vld [vmem:[%s785_s5 + $0x18] sm:$0xff]  ;;  %v52_v41 = vld [vmem:[%s785_s5 + $0x28] sm:$0xff]  ;;  %v340_v15 = vsub.s32 1, %v330_v14  ;;  %v356_v18 = vsub.s32 3, %v330_v14 }
   0xc   :  { %521 = vmatpush3.bf16.msra.mxu0 %v520_v10  ;;  %v538_v36 = vpack.c.bf16 %v48_v35, %v47_v34  ;;  %v541_v39 = vpack.c.bf16 %v50_v38, %v49_v37  ;;  %v51_v40 = vld [vmem:[%s785_s5 + $0x20] sm:$0xff]  ;;  %v53_v43 = vld [vmem:[%s785_s5 + $0x30] sm:$0xff]  ;;  %v54_v44 = vld [vmem:[%s785_s5 + $0x38] sm:$0xff]  ;;  %p578_p3 = por %p577_p2, %p576_p1 }
   0xd   :  { %522 = vmatprep.subr.bf16.mxu0 %v595_v3  ;;  %v544_v42 = vpack.c.bf16 %v52_v41, %v51_v40  ;;  %v547_v45 = vpack.c.bf16 %v54_v44, %v53_v43  ;;  %v230_v58 = vld [vmem:[%s781_s1] sm:$0xff] }
   0xe   :  { %539 = vmatpush3.bf16.msra.mxu1 %v538_v36  ;;  %v421_v59 = vld [vmem:[%s786_s6] ss:$0 sm:$0xff]  ;;  %p579_p4 = pnand %p578_p3, %p572_p0 }
   0xf   :  { %540 = vmatprep.subr.bf16.mxu1 %v595_v3  ;;  %v425_v1 = vld [vmem:[%s782_s2] ss:$0 sm:$0xff]  ;;  %s598_s2 = smov 64  }
  0x10   :  { %524 = vmatpush3.bf16.msra.mxu0 %v523_v13  ;;  %v328_v17 = vld [vmem:[%s787_s7] sm:$0xf]  ;;  %s599_s7 = smov 72  }
  0x11   :  { %525 = vmatprep.subr.bf16.mxu0 %v595_v3  ;;  %v341_v20 = vrot.slane %v328_v17, %v340_v15  ;;  %v357_v24 = vrot.slane %v328_v17, %v356_v18 }
  0x12   :  { %542 = vmatpush3.bf16.msra.mxu1 %v541_v39 }
  0x13   :  { %543 = vmatprep.subr.bf16.mxu1 %v595_v3 }
  0x14   :  { %527 = vmatpush3.bf16.msra.mxu0 %v526_v16  ;;  %v331_v16 = vsub.s32 0, %v330_v14 }
  0x15   :  { %528 = vmatprep.subr.bf16.mxu0 %v595_v3 }
  0x16   :  { %545 = vmatpush3.bf16.msra.mxu1 %v544_v42  ;;  %v332_v21 = vrot.slane %v328_v17, %v331_v16 }
  0x17   :  { %546 = vmatprep.subr.bf16.mxu1 %v595_v3 }
  0x18   :  { %530 = vmatpush3.bf16.msra.mxu0 %v529_v19  ;;  %v348_v19 = vsub.s32 2, %v330_v14 }
  0x19   :  { %531 = vmatprep.subr.bf16.mxu0 %v595_v3 }
  0x1a   :  { %548 = vmatpush3.bf16.msra.mxu1 %v547_v45 }
  0x1b   :  { %508 = vmatprep.subr.mxu1 %v597_v6 }
  0x1c   :  { %533 = vmatpush3.bf16.msra.mxu0 %v532_v22 }
  0x1d   :  { %534 = vmatprep.subr.bf16.mxu0 %v595_v3 }
  0x20   :  { %536 = vmatpush3.bf16.msra.mxu0 %v535_v25  ;;  %v349_v25 = vrot.slane %v328_v17, %v348_v19 }
  0x23   :  { %487 = vmatmul.mubr.f32.vlgmr.msra.gmra.mrb[0].mxu0 %v56_v26 }
  0xf6   :  { %v129_v28 = vpop.f32.mrb[0].mxu0 }
  0xf7   :  { %v130_v29 = vadd.f32 %v420_v27, %v129_v28  ;;  %v488_v30 = vpop.f32.mrb[1].mxu0 }
  0xf9   :  { %v134_v31 = vsel %vm133_vm1, %v130_v29, 0.0  ;;  %v138_v32 = vmul.f32 %v130_v29, %v130_v29 }
  0xfa   :  { %135 = vadd.xlane.f32.xlu0 %v134_v31 }
  0xfb   :  { %v139_v33 = vsel %vm133_vm1, %v138_v32, 0.0 }
  0xfe   :  { %140 = vadd.xlane.f32.xlu0 %v139_v33 }
 0x187   :  { %v136_v46 = vpop.xlane.xlu0 %135 }
 0x188   :  { %v137_v47 = vmul.f32 0.02, %v136_v46 }
 0x18a   :  { %v143_v49 = vmul.f32 %v137_v47, %v137_v47  ;;  %v146_v54 = vsub.f32 %v130_v29, %v137_v47 }
 0x18b   :  { %v141_v48 = vpop.xlane.xlu0 %140 }
 0x18c   :  { %v142_v50 = vmul.f32 0.02, %v141_v48 }
 0x18e   :  { %v144_v51 = vsub.f32 %v142_v50, %v143_v49 }
 0x190   :  { %v145_v52 = vmax.f32 %v144_v51, 0.0 }
 0x192   :  { %v147_v53 = vadd.f32 1e-05, %v145_v52 }
 0x194   :  { %555 = vrsqrt.f32 %v147_v53 }
 0x19e   :  { %v556_v55 = vpop.eup %555 }
 0x19f   :  { %v149_v56 = vmul.f32 %v556_v55, %v146_v54 }
 0x1a1   :  { %v150_v57 = vmax.f32 %v149_v56, 0.0 }
 0x1a3   :  { %506 = vmatmul.mubr.msk.f32.vlgmr.msra.gmra.mrb[0].mxu1 %vm133_vm1, %v150_v57 }
 0x1a4   :  { %509 = vmatpush3.xpose.msk.msra.mxu1 %vm133_vm1, %v230_v58  ;;  %510 = vmatprep.mubr.msk.f32.mxu1 %vm596_vm0, %v597_v6 }
 0x276   :  { %v226_v60 = vpop.f32.mrb[0].mxu1 }
 0x277   :  { %v753_v61 = vadd.f32 %v421_v59, %v226_v60  ;;  %v507_v62 = vpop.f32.mrb[1].mxu1 }
 0x279   :  { %511 = vmatmul.mubr.msk.f32.vlgmr.msra.gmra.mrb[2].mxu1 %vm133_vm1, %v753_v61  ;;  %v232_v63 = vmul.f32 %v753_v61, %v753_v61 }
 0x27b   :  { %v233_v0 = vsel %vm133_vm1, %v232_v63, 0.0 }
 0x27c   :  { %234 = vadd.xlane.f32.xlu1 %v233_v0 }
 0x309   :  { %v235_v2 = vpop.xlane.xlu1 %234 }
 0x30a   :  { %v318_v4 = vadd.f32 %v425_v1, %v235_v2 }
 0x34c   :  { %v308_v3 = vpop.f32.mrb[2].mxu1 }
 0x34d   :  { %v319_v5 = vmul.f32 2.0, %v308_v3  ;;  %v512_v6 = vpop.f32.mrb[3].mxu1 }
 0x34f   :  { %v320_v7 = vsub.f32 %v318_v4, %v319_v5 }
 0x351   :  { %v321_v8 = vmax.f32 %v320_v7, 0.0 }
 0x353   :  { %v323_v9 = vadd.f32 1e-05, %v321_v8  ;;  %v322_v10 = vadd.f32 1.0, %v321_v8 }
 0x355   :  { %557 = vrcp.f32 %v323_v9 }
 0x35f   :  { %v558_v11 = vpop.eup %557 }
 0x360   :  { %v325_v13 = vmul.f32 %v558_v11, %v322_v10 }
 0x362   :  { %559 = vlog2.f32 %v325_v13 }
 0x36c   :  { %v560_v22 = vpop.eup %559 }
 0x36d   :  { %v327_v23 = vmul.f32 0.6931472, %v560_v22 }
 0x36f   :  { %v342_v26 = vmul.f32 %v341_v20, %v327_v23  ;;  %v333_v27 = vmul.f32 %v332_v21, %v327_v23  ;;  %v358_v30 = vmul.f32 %v357_v24, %v327_v23  ;;  %v350_v31 = vmul.f32 %v349_v25, %v327_v23 }
 0x371   :  { %v343_v28 = vsel %vm334_vm2, %v342_v26, 0.0  ;;  %v335_v29 = vsel %vm334_vm2, %v333_v27, 0.0  ;;  %v359_v32 = vsel %vm334_vm2, %v358_v30, 0.0  ;;  %v351_v33 = vsel %vm334_vm2, %v350_v31, 0.0 }
 0x372   :  { %344 = vadd.xlane.f32.xlu0 %v343_v28  ;;  %336 = vadd.xlane.f32.xlu1 %v335_v29 }
 0x376   :  { %360 = vadd.xlane.f32.xlu0 %v359_v32  ;;  %352 = vadd.xlane.f32.xlu1 %v351_v33 }
 0x387   :  { %393 = vrot.lane.b32.xlu1 %v327_v23, %s598_s2 }
 0x3ff   :  { %v345_v34 = vpop.xlane.xlu0 %344  ;;  %v337_v35 = vpop.xlane.xlu1 %336 }
 0x400   :  { %v362_v36 = vmax.f32 %v337_v35, %v345_v34 }
 0x403   :  { %v353_v37 = vpop.xlane.xlu1 %352  ;;  %v361_v39 = vpop.xlane.xlu0 %360 }
 0x404   :  { %v363_v38 = vmax.f32 %v362_v36, %v353_v37 }
 0x406   :  { %v364_v40 = vmax.f32 %v363_v38, %v361_v39 }
 0x407   :  { %v394_v1 = vpop.permute.xlu1 %393 }
 0x408   :  { %v365_v41 = vsub.f32 %v337_v35, %v364_v40  ;;  %v368_v42 = vsub.f32 %v345_v34, %v364_v40  ;;  %v371_v43 = vsub.f32 %v353_v37, %v364_v40  ;;  %v374_v44 = vsub.f32 %v361_v39, %v364_v40 }
 0x409   :  { %v400_v2 = vsel %vm133_vm1, %v753_v61, %v394_v1 }
 0x40a   :  { %v366_v45 = vmul.f32 1.442695, %v365_v41  ;;  %v369_v46 = vmul.f32 1.442695, %v368_v42  ;;  %v372_v47 = vmul.f32 1.442695, %v371_v43 }
 0x40b   :  { %v375_v48 = vmul.f32 1.442695, %v374_v44 }
 0x40c   :  { %561 = vpow2.f32 %v366_v45 }
 0x40d   :  { %563 = vpow2.f32 %v369_v46 }
 0x40e   :  { %565 = vpow2.f32 %v372_v47 }
 0x40f   :  { %567 = vpow2.f32 %v375_v48 }
 0x416   :  { %v562_v49 = vpop.eup %561 }
 0x417   :  { %v564_v50 = vpop.eup %563 }
 0x418   :  { %v377_v51 = vadd.f32 %v564_v50, %v562_v49  ;;  %v566_v52 = vpop.eup %565 }
 0x419   :  { %v568_v54 = vpop.eup %567 }
 0x41a   :  { %v378_v53 = vadd.f32 %v566_v52, %v377_v51 }
 0x41c   :  { %v379_v55 = vadd.f32 %v568_v54, %v378_v53 }
 0x41e   :  { %569 = vrcp.f32 %v379_v55 }
 0x428   :  { %v570_v56 = vpop.eup %569 }
 0x429   :  { %v382_v57 = vmul.f32 %v570_v56, %v562_v49  ;;  %v383_v58 = vmul.f32 %v570_v56, %v564_v50  ;;  %v384_v59 = vmul.f32 %v570_v56, %v566_v52  ;;  %v385_v60 = vmul.f32 %v570_v56, %v568_v54 }
 0x42b   :  { %v387_v62 = vsel %vm386_vm3, %v382_v57, %v383_v58 }
 0x42c   :  { %v389_v63 = vsel %vm388_vm4, %v387_v62, %v384_v59 }
 0x42d   :  { %v391_v0 = vsel %vm390_vm5, %v389_v63, %v385_v60 }
 0x42e   :  { %397 = vrot.lane.b32.xlu0 %v391_v0, %s599_s7 }
 0x4a0   :  { %v398_v3 = vpop.permute.xlu0 %397 }
 0x4a1   :  { %v402_v4 = vsel %vm401_vm6, %v400_v2, %v398_v3 }
 0x4a2   :  { %v404_v5 = vsel %vm403_vm7, %v402_v4, 0.0 }
 0x4a3   :  { %405 = vst [vmem:[#allocation2] sm:$0xff] %v404_v5 }
 0x4a4   :  { %582 = shalt.err (!%p579_p4)
}
 0x4a5   :  { %s583_s19 = scalar_lea.hbm %s788_s8, 128 }
 0x4a6   :  { %p584_p5 = scmp.ne.s32.totalorder %s788_s8, %s583_s19  ;;  %p587_p6 = scmp.lt.u32.totalorder %s583_s19, %s788_s8 }
 0x4a8   :  { %p589_p7 = pnand %p587_p6, %p584_p5 }
 0x4aa   :  { %592 = shalt.err (!%p589_p7)
}
 0x4ab   :  { %415 = dma.vmem_to_hbm [thread:$0]  %s413_s16, 128, %s788_s8, [#allocation3]  }
 0x4ac   :  { %593 = dma.done.wait [#allocation3], 128  }
 0x4ad   :  { %594 = vsyncadd [#allocation3], 4294967168 }
 0x4ae   :  { %419 = vsyncpa [#allocation3], 1 }

</bundles_post_ra>
